<compile_context>
chip_gen: v5e
topology: v5e:2x2
jax: 0.10.0
libtpu: 0.0.40
codegen_flags: <defaults>
</compile_context>

<pallas_src>
import functools

import jax
import jax.numpy as jnp
from jax.experimental import pallas as pl
from jax.experimental.pallas import tpu as pltpu


def _round_up(v, m):
    return (v + m - 1) // m * m


# --------------------------------------------------------------------------- #
# Kernel
# --------------------------------------------------------------------------- #
def _fp_kernel(k, Ns,
               win_ref,                                    # scalar-prefetch (SMEM)
               pos_prev_ref, bprev_ref, pos_t_ref, bsrc_ref, x_ref, xprev_ref,
               w1a_ref, w1b_ref, b1_ref, w2_ref, b2_ref,
               out_ref):
    i = pl.program_id(0)
    # 128-aligned element offset of this tile's source window.
    ws = pl.multiple_of(win_ref[i], 128)

    pp = pos_prev_ref[...]                       # (tm, 3) f32 target coords
    pt = pos_t_ref[:, pl.ds(ws, Ns)]             # (3, Ns) f32 source coords (window)
    bs = bsrc_ref[:, pl.ds(ws, Ns)]              # (1, Ns) i32 source batch ids
    tm = pp.shape[0]

    # pairwise squared distances, direct-difference form on the VPU (MXU stays free)
    d2 = jnp.zeros((tm, Ns), jnp.float32)
    for c in range(3):                            # static, unrolled
        diff = pp[:, c:c + 1] - pt[c:c + 1, :]    # (tm,1)-(1,Ns) -> (tm,Ns)
        d2 = d2 + diff * diff

    # fold the cross-batch mask into the distances once
    BIG = jnp.float32(1e30)
    dist = jnp.where(bprev_ref[...] != bs, BIG, d2)

    # iterative k-NN selection building ONE sparse weight matrix.
    # Single XLU reduction per iteration; exact-distance ties share a slot
    # (measure-zero for real coordinates, documented divergence vs strict top-k).
    w_mat = jnp.zeros((tm, Ns), jnp.float32)
    for _ in range(k):                            # k is small & static
        dmin = jnp.min(dist, axis=-1, keepdims=True)              # (tm, 1)
        sel = dist == dmin                                         # (tm, Ns)
        w = pl.reciprocal(jnp.maximum(dmin, 1e-16), approx=True)   # EUP, ~free
        w_mat = w_mat + jnp.where(sel, w, 0.0)
        dist = jnp.where(sel, BIG, dist)                           # drop chosen

    # normalize (guard underflow for rows with no same-batch sources), then
    # one gather/interpolation matmul on the MXU (bf16 x bf16 -> f32).
    acc_w = jnp.maximum(jnp.sum(w_mat, axis=-1, keepdims=True), 1e-20)
    w_norm = (w_mat * pl.reciprocal(acc_w, approx=True)).astype(jnp.bfloat16)
    interp = jnp.dot(w_norm, x_ref[pl.ds(ws, Ns), :],
                     preferred_element_type=jnp.float32)           # (tm, C)

    # concat([interp, x_prev]) @ W1 as a split matmul, then 2-layer ReLU MLP.
    h = (jnp.dot(interp.astype(jnp.bfloat16), w1a_ref[...],
                 preferred_element_type=jnp.float32)
         + jnp.dot(xprev_ref[...], w1b_ref[...],
                   preferred_element_type=jnp.float32)
         + b1_ref[...])
    h = jnp.maximum(h, 0.0)
    o = (jnp.dot(h.astype(jnp.bfloat16), w2_ref[...],
                 preferred_element_type=jnp.float32)
         + b2_ref[...])
    out_ref[...] = jnp.maximum(o, 0.0)


# --------------------------------------------------------------------------- #
# One-time parameter preparation (hoisted out of the per-call wrapper)
# --------------------------------------------------------------------------- #
def prepare_fp_params(params):
    """Pad MLP dims to 128 lanes and cast weights to bf16 (done once at init)."""
    W1a, W1b, b1, W2, b2 = params
    C, H = W1a.shape
    Cp = W1b.shape[0]
    Co = W2.shape[1]
    Hp = _round_up(H, 128)
    Cop = _round_up(Co, 128)
    return dict(
        W1a=jnp.pad(W1a.astype(jnp.float32), ((0, 0), (0, Hp - H))).astype(jnp.bfloat16),
        W1b=jnp.pad(W1b.astype(jnp.float32), ((0, 0), (0, Hp - H))).astype(jnp.bfloat16),
        b1=jnp.pad(b1.astype(jnp.float32).reshape(1, H), ((0, 0), (0, Hp - H))),
        W2=jnp.pad(W2.astype(jnp.float32), ((0, Hp - H), (0, Cop - Co))).astype(jnp.bfloat16),
        b2=jnp.pad(b2.astype(jnp.float32).reshape(1, Co), ((0, 0), (0, Cop - Co))),
        C=C, Cp=Cp, H=H, Co=Co, Hp=Hp, Cop=Cop,
    )


def _vmem_limit_bytes(Np, C, Cp, Hp, Cop, tm, Ns):
    """Rough scoped-VMEM budget from resident buffers + live (tm,Ns) temporaries."""
    def pad_bytes(rows, cols, itemsize):
        sub = 8 * (4 // itemsize)                 # 8 for f32/i32, 16 for bf16
        return _round_up(rows, sub) * _round_up(cols, 128) * itemsize

    resident = (pad_bytes(3, Np, 4) + pad_bytes(1, Np, 4) + pad_bytes(Np, C, 2)
                + pad_bytes(C, Hp, 2) + pad_bytes(Cp, Hp, 2) + pad_bytes(Hp, Cop, 2)
                + pad_bytes(1, Hp, 4) + pad_bytes(1, Cop, 4))
    per_tile = 2 * (pad_bytes(tm, 3, 4) + pad_bytes(tm, 1, 4)
                    + pad_bytes(tm, Cp, 2) + pad_bytes(tm, Cop, 4))
    temps = 8 * pad_bytes(tm, Ns, 4)              # dist/w_mat/sel/diff live set + slack
    est = resident + per_tile + temps
    return int(min(max(2 * est + (4 << 20), 32 << 20), 100 << 20))


# --------------------------------------------------------------------------- #
# Wrapper
# --------------------------------------------------------------------------- #
def fp_module(x, pos, batch, x_prev, pos_prev, batch_prev, prepped, *, k=3, tm=128):
    """FPModule.forward: knn_interpolate -> concat(x_prev) -> MLP.

    `batch` / `batch_prev` must be sorted (torch_geometric convention).
    `prepped` comes from prepare_fp_params() (one-time weight prep).
    """
    N, C = x.shape
    M, Cp = x_prev.shape
    assert C == prepped["C"] and Cp == prepped["Cp"]
    Hp, Cop, Co = prepped["Hp"], prepped["Cop"], prepped["Co"]

    # --- tile size: ensure >= 2 grid steps where possible (v7x has 2 TCs) -----
    tm = min(tm, _round_up(M, 8))
    if _round_up(M, tm) // tm < 2 and M > 8:
        tm = _round_up((M + 1) // 2, 8)
    Mp = _round_up(M, tm)
    num_tiles = Mp // tm
    pad_m = Mp - M

    # --- pad sources lane-dense along N; fake sources get batch id -1 ---------
    Np = _round_up(N, 128)
    pad_n = Np - N
    pos_t = jnp.pad(pos.astype(jnp.float32).T, ((0, 0), (0, pad_n)))          # (3, Np)
    bsrc = jnp.pad(batch.astype(jnp.int32), (0, pad_n),
                   constant_values=-1).reshape(1, Np)
    x_bf16 = jnp.pad(x.astype(jnp.float32), ((0, pad_n), (0, 0))).astype(jnp.bfloat16)

    # --- pad targets; padded rows get batch -2 (always masked, sliced off) ----
    pos_prev_p = jnp.pad(pos_prev.astype(jnp.float32), ((0, pad_m), (0, 0)))
    bprev_p = jnp.pad(batch_prev.astype(jnp.int32), (0, pad_m),
                      constant_values=-2).reshape(Mp, 1)
    xprev_p = jnp.pad(x_prev.astype(jnp.float32),
                      ((0, pad_m), (0, 0))).astype(jnp.bfloat16)

    # --- per-tile source window (scalar prefetch): restrict the k-NN scan to
    #     the batch segment(s) this target tile actually touches ---------------
    bprev_i32 = batch_prev.astype(jnp.int32)
    bsrc_i32 = batch.astype(jnp.int32)
    row_lo = jnp.minimum(jnp.arange(num_tiles) * tm, M - 1)
    row_hi = jnp.minimum(jnp.arange(num_tiles) * tm + (tm - 1), M - 1)
    src_lo = jnp.searchsorted(bsrc_i32, bprev_i32[row_lo], side="left")
    src_hi = jnp.searchsorted(bsrc_i32, bprev_i32[row_hi], side="right")
    aligned_lo = (src_lo // 128) * 128
    span = jnp.maximum(src_hi - aligned_lo, 1)
    max_span = int(jnp.max(span))                 # host-side; fixed per batch layout
    Ns = min(_round_up(max_span, 128), Np)
    win_start = jnp.clip(aligned_lo, 0, Np - Ns).astype(jnp.int32)

    vmem_limit = _vmem_limit_bytes(Np, C, Cp, Hp, Cop, tm, Ns)

    # constant-index resident blocks: single-buffered (no useless double-buffer)
    def const(r, c):
        return pl.BlockSpec((r, c), lambda i, win: (0, 0),
                            pipeline_mode=pl.Buffered(1))

    in_specs = [
        pl.BlockSpec((tm, 3), lambda i, win: (i, 0)),    # pos_prev tile
        pl.BlockSpec((tm, 1), lambda i, win: (i, 0)),    # batch_prev tile
        const(3, Np),                                    # pos_t (all sources)
        const(1, Np),                                    # batch (all sources)
        const(Np, C),                                    # x (bf16, resident)
        pl.BlockSpec((tm, Cp), lambda i, win: (i, 0)),   # x_prev tile (bf16)
        const(C, Hp), const(Cp, Hp), const(1, Hp),       # W1a, W1b, b1
        const(Hp, Cop), const(1, Cop),                   # W2, b2
    ]

    out = pl.pallas_call(
        functools.partial(_fp_kernel, k, Ns),
        out_shape=jax.ShapeDtypeStruct((Mp, Cop), jnp.float32),
        grid_spec=pltpu.PrefetchScalarGridSpec(
            num_scalar_prefetch=1,
            grid=(num_tiles,),
            in_specs=in_specs,
            out_specs=pl.BlockSpec((tm, Cop), lambda i, win: (i, 0)),
        ),
        compiler_params=pltpu.CompilerParams(
            dimension_semantics=("parallel",),
            vmem_limit_bytes=vmem_limit),
    )(win_start, pos_prev_p, bprev_p, pos_t, bsrc, x_bf16, xprev_p,
      prepped["W1a"], prepped["W1b"], prepped["b1"], prepped["W2"], prepped["b2"])

    out = out[:M, :Co]
    # Module returns (x, pos_prev, batch_prev)
    return out, pos_prev, batch_prev


# --------------------------------------------------------------------------- #
# Pure-JAX reference
# --------------------------------------------------------------------------- #
def _reference(x, pos, batch, x_prev, pos_prev, batch_prev, params, k):
    W1a, W1b, b1, W2, b2 = params
    d2 = jnp.sum((pos_prev[:, None, :] - pos[None, :, :]) ** 2, axis=-1)
    d2 = jnp.where(batch_prev[:, None] != batch[None, :], 1e30, d2)
    neg, idx = jax.lax.top_k(-d2, k)                          # k smallest
    dmin = -neg
    w = 1.0 / jnp.maximum(dmin, 1e-16)                        # (M, k)
    feats = x[idx]                                            # (M, k, C)
    interp = jnp.sum(w[..., None] * feats, axis=1) / jnp.sum(w, axis=1, keepdims=True)
    h = jnp.maximum(interp @ W1a + x_prev @ W1b + b1, 0.0)
    return jnp.maximum(h @ W2 + b2, 0.0)


if __name__ == "__main__":
    key = jax.random.PRNGKey(0)
    ks = jax.random.split(key, 10)

    # Small shapes: 2 batches, 128 source pts/batch, 32 target pts/batch.
    # (Large enough that the per-tile source-window path and tm-splitting are
    #  actually exercised, still tiny/fast.)
    N, M = 256, 64
    C, Cp = 16, 16        # knn-interpolated feature dim / skip feature dim
    H, Co = 64, 32        # MLP hidden / output dims
    k = 3

    pos = jax.random.normal(ks[0], (N, 3), jnp.float32)
    pos_prev = jax.random.normal(ks[1], (M, 3), jnp.float32)
    x = jax.random.normal(ks[2], (N, C), jnp.float32)
    x_prev = jax.random.normal(ks[3], (M, Cp), jnp.float32)
    batch = jnp.concatenate([jnp.zeros(N // 2, jnp.int32),
                             jnp.ones(N // 2, jnp.int32)])
    batch_prev = jnp.concatenate([jnp.zeros(M // 2, jnp.int32),
                                  jnp.ones(M // 2, jnp.int32)])

    # Deterministic MLP params: nn = Seq(Lin(C+Cp, H), ReLU, Lin(H, Co), ReLU)
    W1 = jax.random.normal(ks[4], (C + Cp, H), jnp.float32) * 0.1
    b1 = jax.random.normal(ks[5], (1, H), jnp.float32) * 0.1
    W2 = jax.random.normal(ks[6], (H, Co), jnp.float32) * 0.1
    b2 = jax.random.normal(ks[7], (1, Co), jnp.float32) * 0.1
    params = (W1[:C], W1[C:], b1, W2, b2)

    prepped = prepare_fp_params(params)          # one-time weight prep (hoisted)

    out, pos_out, batch_out = fp_module(
        x, pos, batch, x_prev, pos_prev, batch_prev, prepped, k=k, tm=128)
    jax.block_until_ready(out)

    ref = _reference(x, pos, batch, x_prev, pos_prev, batch_prev, params, k)
    assert out.shape == (M, Co)
    # tolerance covers bf16 features/weights/activations + approx (EUP) reciprocals
    assert jnp.allclose(out, ref, atol=1e-1, rtol=5e-2), "mismatch vs reference"

    print("KERNEL_OK")
</pallas_src>

<mosaic_0001>
module attributes {stable_mosaic.version = 11 : i64} {
  func.func @_fp_kernel(%arg0: i32, %arg1: memref<2xi32, #tpu.memory_space<smem>>, %arg2: memref<32x3xf32, #tpu.memory_space<vmem>>, %arg3: memref<32x1xi32, #tpu.memory_space<vmem>>, %arg4: memref<3x256xf32, #tpu.memory_space<vmem>>, %arg5: memref<1x256xi32, #tpu.memory_space<vmem>>, %arg6: memref<256x16xbf16, #tpu.memory_space<vmem>>, %arg7: memref<32x16xbf16, #tpu.memory_space<vmem>>, %arg8: memref<16x128xbf16, #tpu.memory_space<vmem>>, %arg9: memref<16x128xbf16, #tpu.memory_space<vmem>>, %arg10: memref<1x128xf32, #tpu.memory_space<vmem>>, %arg11: memref<128x128xbf16, #tpu.memory_space<vmem>>, %arg12: memref<1x128xf32, #tpu.memory_space<vmem>>, %arg13: memref<32x128xf32, #tpu.memory_space<vmem>>) attributes {dimension_semantics = [#tpu.dimension_semantics<parallel>], iteration_bounds = array<i64: 2>, scalar_prefetch = 1 : i64, scratch_operands = 0 : i64, tpu.core_type = #tpu.core_type<tc>, window_params = [{transform_indices = @transform_0, window_bounds = array<i64: 32, 3>}, {transform_indices = @transform_1, window_bounds = array<i64: 32, 1>}, {pipeline_mode = #tpu.pipeline_mode<synchronous>, transform_indices = @transform_2, window_bounds = array<i64: 3, 256>}, {pipeline_mode = #tpu.pipeline_mode<synchronous>, transform_indices = @transform_3, window_bounds = array<i64: 1, 256>}, {pipeline_mode = #tpu.pipeline_mode<synchronous>, transform_indices = @transform_4, window_bounds = array<i64: 256, 16>}, {transform_indices = @transform_5, window_bounds = array<i64: 32, 16>}, {pipeline_mode = #tpu.pipeline_mode<synchronous>, transform_indices = @transform_6, window_bounds = array<i64: 16, 128>}, {pipeline_mode = #tpu.pipeline_mode<synchronous>, transform_indices = @transform_7, window_bounds = array<i64: 16, 128>}, {pipeline_mode = #tpu.pipeline_mode<synchronous>, transform_indices = @transform_8, window_bounds = array<i64: 1, 128>}, {pipeline_mode = #tpu.pipeline_mode<synchronous>, transform_indices = @transform_9, window_bounds = array<i64: 128, 128>}, {pipeline_mode = #tpu.pipeline_mode<synchronous>, transform_indices = @transform_10, window_bounds = array<i64: 1, 128>}, {transform_indices = @transform_11, window_bounds = array<i64: 32, 128>}]} {
    %0 = arith.index_cast %arg0 : i32 to index
    %1 = memref.load %arg1[%0] : memref<2xi32, #tpu.memory_space<smem>>
    %2 = tpu.assume_multiple %1, 128 : i32
    %c0 = arith.constant 0 : index
    %c0_0 = arith.constant 0 : index
    %3 = vector.load %arg2[%c0, %c0_0] : memref<32x3xf32, #tpu.memory_space<vmem>>, vector<32x3xf32>
    %c0_1 = arith.constant 0 : index
    %4 = arith.index_cast %2 : i32 to index
    %5 = vector.load %arg4[%c0_1, %4] : memref<3x256xf32, #tpu.memory_space<vmem>>, vector<3x128xf32>
    %c0_2 = arith.constant 0 : index
    %6 = arith.index_cast %2 : i32 to index
    %7 = vector.load %arg5[%c0_2, %6] : memref<1x256xi32, #tpu.memory_space<vmem>>, vector<1x128xi32>
    %cst = arith.constant 0.000000e+00 : f32
    %8 = vector.broadcast %cst : f32 to vector<32x128xf32>
    %9 = vector.extract_strided_slice %3 {offsets = [0, 0], sizes = [32, 1], strides = [1, 1]} : vector<32x3xf32> to vector<32x1xf32>
    %10 = vector.extract_strided_slice %5 {offsets = [0, 0], sizes = [1, 128], strides = [1, 1]} : vector<3x128xf32> to vector<1x128xf32>
    %11 = vector.broadcast %9 : vector<32x1xf32> to vector<32x128xf32>
    %12 = vector.broadcast %10 : vector<1x128xf32> to vector<32x128xf32>
    %13 = arith.subf %11, %12 : vector<32x128xf32>
    %14 = arith.mulf %13, %13 : vector<32x128xf32>
    %15 = arith.addf %8, %14 : vector<32x128xf32>
    %16 = vector.extract_strided_slice %3 {offsets = [0, 1], sizes = [32, 1], strides = [1, 1]} : vector<32x3xf32> to vector<32x1xf32>
    %17 = vector.extract_strided_slice %5 {offsets = [1, 0], sizes = [1, 128], strides = [1, 1]} : vector<3x128xf32> to vector<1x128xf32>
    %18 = vector.broadcast %16 : vector<32x1xf32> to vector<32x128xf32>
    %19 = vector.broadcast %17 : vector<1x128xf32> to vector<32x128xf32>
    %20 = arith.subf %18, %19 : vector<32x128xf32>
    %21 = arith.mulf %20, %20 : vector<32x128xf32>
    %22 = arith.addf %15, %21 : vector<32x128xf32>
    %23 = vector.extract_strided_slice %3 {offsets = [0, 2], sizes = [32, 1], strides = [1, 1]} : vector<32x3xf32> to vector<32x1xf32>
    %24 = vector.extract_strided_slice %5 {offsets = [2, 0], sizes = [1, 128], strides = [1, 1]} : vector<3x128xf32> to vector<1x128xf32>
    %25 = vector.broadcast %23 : vector<32x1xf32> to vector<32x128xf32>
    %26 = vector.broadcast %24 : vector<1x128xf32> to vector<32x128xf32>
    %27 = arith.subf %25, %26 : vector<32x128xf32>
    %28 = arith.mulf %27, %27 : vector<32x128xf32>
    %29 = arith.addf %22, %28 : vector<32x128xf32>
    %c0_3 = arith.constant 0 : index
    %c0_4 = arith.constant 0 : index
    %30 = vector.load %arg3[%c0_3, %c0_4] : memref<32x1xi32, #tpu.memory_space<vmem>>, vector<32x1xi32>
    %31 = vector.broadcast %30 : vector<32x1xi32> to vector<32x128xi32>
    %32 = vector.broadcast %7 : vector<1x128xi32> to vector<32x128xi32>
    %33 = arith.cmpi ne, %31, %32 : vector<32x128xi32>
    %cst_5 = arith.constant 1.000000e+30 : f32
    %34 = vector.broadcast %cst_5 : f32 to vector<32x128xf32>
    %35 = arith.select %33, %34, %29 : vector<32x128xi1>, vector<32x128xf32>
    %cst_6 = arith.constant 0.000000e+00 : f32
    %36 = vector.broadcast %cst_6 : f32 to vector<32x128xf32>
    %cst_7 = arith.constant dense<0x7F800000> : vector<32xf32>
    %37 = vector.multi_reduction <minimumf>, %35, %cst_7 [1] : vector<32x128xf32> to vector<32xf32>
    %38 = vector.shape_cast %37 : vector<32xf32> to vector<32x1xf32>
    %39 = vector.broadcast %38 : vector<32x1xf32> to vector<32x128xf32>
    %40 = arith.cmpf oeq, %35, %39 : vector<32x128xf32>
    %cst_8 = arith.constant 1.000000e-16 : f32
    %41 = vector.broadcast %cst_8 : f32 to vector<32x1xf32>
    %42 = arith.maximumf %38, %41 : vector<32x1xf32>
    %43 = tpu.reciprocal %42 {approx = true} : vector<32x1xf32> -> vector<32x1xf32>
    %cst_9 = arith.constant 0.000000e+00 : f32
    %44 = vector.shape_cast %43 : vector<32x1xf32> to vector<32x1xf32>
    %45 = vector.broadcast %44 : vector<32x1xf32> to vector<32x128xf32>
    %46 = vector.broadcast %cst_9 : f32 to vector<32x128xf32>
    %47 = arith.select %40, %45, %46 : vector<32x128xi1>, vector<32x128xf32>
    %48 = arith.addf %36, %47 : vector<32x128xf32>
    %cst_10 = arith.constant 1.000000e+30 : f32
    %49 = vector.broadcast %cst_10 : f32 to vector<32x128xf32>
    %50 = arith.select %40, %49, %35 : vector<32x128xi1>, vector<32x128xf32>
    %cst_11 = arith.constant dense<0x7F800000> : vector<32xf32>
    %51 = vector.multi_reduction <minimumf>, %50, %cst_11 [1] : vector<32x128xf32> to vector<32xf32>
    %52 = vector.shape_cast %51 : vector<32xf32> to vector<32x1xf32>
    %53 = vector.broadcast %52 : vector<32x1xf32> to vector<32x128xf32>
    %54 = arith.cmpf oeq, %50, %53 : vector<32x128xf32>
    %cst_12 = arith.constant 1.000000e-16 : f32
    %55 = vector.broadcast %cst_12 : f32 to vector<32x1xf32>
    %56 = arith.maximumf %52, %55 : vector<32x1xf32>
    %57 = tpu.reciprocal %56 {approx = true} : vector<32x1xf32> -> vector<32x1xf32>
    %cst_13 = arith.constant 0.000000e+00 : f32
    %58 = vector.shape_cast %57 : vector<32x1xf32> to vector<32x1xf32>
    %59 = vector.broadcast %58 : vector<32x1xf32> to vector<32x128xf32>
    %60 = vector.broadcast %cst_13 : f32 to vector<32x128xf32>
    %61 = arith.select %54, %59, %60 : vector<32x128xi1>, vector<32x128xf32>
    %62 = arith.addf %48, %61 : vector<32x128xf32>
    %cst_14 = arith.constant 1.000000e+30 : f32
    %63 = vector.broadcast %cst_14 : f32 to vector<32x128xf32>
    %64 = arith.select %54, %63, %50 : vector<32x128xi1>, vector<32x128xf32>
    %cst_15 = arith.constant dense<0x7F800000> : vector<32xf32>
    %65 = vector.multi_reduction <minimumf>, %64, %cst_15 [1] : vector<32x128xf32> to vector<32xf32>
    %66 = vector.shape_cast %65 : vector<32xf32> to vector<32x1xf32>
    %67 = vector.broadcast %66 : vector<32x1xf32> to vector<32x128xf32>
    %68 = arith.cmpf oeq, %64, %67 : vector<32x128xf32>
    %cst_16 = arith.constant 1.000000e-16 : f32
    %69 = vector.broadcast %cst_16 : f32 to vector<32x1xf32>
    %70 = arith.maximumf %66, %69 : vector<32x1xf32>
    %71 = tpu.reciprocal %70 {approx = true} : vector<32x1xf32> -> vector<32x1xf32>
    %cst_17 = arith.constant 0.000000e+00 : f32
    %72 = vector.shape_cast %71 : vector<32x1xf32> to vector<32x1xf32>
    %73 = vector.broadcast %72 : vector<32x1xf32> to vector<32x128xf32>
    %74 = vector.broadcast %cst_17 : f32 to vector<32x128xf32>
    %75 = arith.select %68, %73, %74 : vector<32x128xi1>, vector<32x128xf32>
    %76 = arith.addf %62, %75 : vector<32x128xf32>
    %cst_18 = arith.constant dense<0.000000e+00> : vector<32xf32>
    %77 = vector.multi_reduction <add>, %76, %cst_18 [1] : vector<32x128xf32> to vector<32xf32>
    %78 = vector.shape_cast %77 : vector<32xf32> to vector<32x1xf32>
    %cst_19 = arith.constant 9.99999968E-21 : f32
    %79 = vector.broadcast %cst_19 : f32 to vector<32x1xf32>
    %80 = arith.maximumf %78, %79 : vector<32x1xf32>
    %81 = tpu.reciprocal %80 {approx = true} : vector<32x1xf32> -> vector<32x1xf32>
    %82 = vector.broadcast %81 : vector<32x1xf32> to vector<32x128xf32>
    %83 = arith.mulf %76, %82 : vector<32x128xf32>
    %84 = arith.truncf %83 : vector<32x128xf32> to vector<32x128xbf16>
    %85 = arith.index_cast %2 : i32 to index
    %c0_20 = arith.constant 0 : index
    %86 = vector.load %arg6[%85, %c0_20] : memref<256x16xbf16, #tpu.memory_space<vmem>>, vector<128x16xbf16>
    %cst_21 = arith.constant dense<0.000000e+00> : vector<32x16xf32>
    %87 = tpu.matmul %84, %86, %cst_21 {dimension_numbers = #tpu.dot_dimension_numbers<[1], [0], [0], [1], [0, 0, 1, 1], [], []>} : vector<32x128xbf16>, vector<128x16xbf16>, vector<32x16xf32> -> vector<32x16xf32>
    %88 = arith.truncf %87 : vector<32x16xf32> to vector<32x16xbf16>
    %c0_22 = arith.constant 0 : index
    %c0_23 = arith.constant 0 : index
    %89 = vector.load %arg8[%c0_22, %c0_23] : memref<16x128xbf16, #tpu.memory_space<vmem>>, vector<16x128xbf16>
    %cst_24 = arith.constant dense<0.000000e+00> : vector<32x128xf32>
    %90 = tpu.matmul %88, %89, %cst_24 {dimension_numbers = #tpu.dot_dimension_numbers<[1], [0], [0], [1], [0, 0, 1, 1], [], []>} : vector<32x16xbf16>, vector<16x128xbf16>, vector<32x128xf32> -> vector<32x128xf32>
    %c0_25 = arith.constant 0 : index
    %c0_26 = arith.constant 0 : index
    %91 = vector.load %arg7[%c0_25, %c0_26] : memref<32x16xbf16, #tpu.memory_space<vmem>>, vector<32x16xbf16>
    %c0_27 = arith.constant 0 : index
    %c0_28 = arith.constant 0 : index
    %92 = vector.load %arg9[%c0_27, %c0_28] : memref<16x128xbf16, #tpu.memory_space<vmem>>, vector<16x128xbf16>
    %cst_29 = arith.constant dense<0.000000e+00> : vector<32x128xf32>
    %93 = tpu.matmul %91, %92, %cst_29 {dimension_numbers = #tpu.dot_dimension_numbers<[1], [0], [0], [1], [0, 0, 1, 1], [], []>} : vector<32x16xbf16>, vector<16x128xbf16>, vector<32x128xf32> -> vector<32x128xf32>
    %94 = arith.addf %90, %93 : vector<32x128xf32>
    %c0_30 = arith.constant 0 : index
    %c0_31 = arith.constant 0 : index
    %95 = vector.load %arg10[%c0_30, %c0_31] : memref<1x128xf32, #tpu.memory_space<vmem>>, vector<1x128xf32>
    %96 = vector.broadcast %95 : vector<1x128xf32> to vector<32x128xf32>
    %97 = arith.addf %94, %96 : vector<32x128xf32>
    %cst_32 = arith.constant 0.000000e+00 : f32
    %98 = vector.broadcast %cst_32 : f32 to vector<32x128xf32>
    %99 = arith.maximumf %97, %98 : vector<32x128xf32>
    %100 = arith.truncf %99 : vector<32x128xf32> to vector<32x128xbf16>
    %c0_33 = arith.constant 0 : index
    %c0_34 = arith.constant 0 : index
    %101 = vector.load %arg11[%c0_33, %c0_34] : memref<128x128xbf16, #tpu.memory_space<vmem>>, vector<128x128xbf16>
    %cst_35 = arith.constant dense<0.000000e+00> : vector<32x128xf32>
    %102 = tpu.matmul %100, %101, %cst_35 {dimension_numbers = #tpu.dot_dimension_numbers<[1], [0], [0], [1], [0, 0, 1, 1], [], []>} : vector<32x128xbf16>, vector<128x128xbf16>, vector<32x128xf32> -> vector<32x128xf32>
    %c0_36 = arith.constant 0 : index
    %c0_37 = arith.constant 0 : index
    %103 = vector.load %arg12[%c0_36, %c0_37] : memref<1x128xf32, #tpu.memory_space<vmem>>, vector<1x128xf32>
    %104 = vector.broadcast %103 : vector<1x128xf32> to vector<32x128xf32>
    %105 = arith.addf %102, %104 : vector<32x128xf32>
    %cst_38 = arith.constant 0.000000e+00 : f32
    %106 = vector.broadcast %cst_38 : f32 to vector<32x128xf32>
    %107 = arith.maximumf %105, %106 : vector<32x128xf32>
    %c0_39 = arith.constant 0 : index
    %c0_40 = arith.constant 0 : index
    %108 = vector.load %arg13[%c0_39, %c0_40] : memref<32x128xf32, #tpu.memory_space<vmem>>, vector<32x128xf32>
    tpu.vector_store %arg13[%c0_39, %c0_40], %107 {strides = array<i32>} : memref<32x128xf32, #tpu.memory_space<vmem>>, vector<32x128xf32>,
    return
  }
  func.func @transform_0(%arg0: i32, %arg1: memref<2xi32, #tpu.memory_space<smem>>) -> (i32, i32) {
    %c0_i32 = arith.constant 0 : i32
    %c0_i32_0 = arith.constant 0 : i32
    return %arg0, %c0_i32 : i32, i32
  }
  func.func @transform_1(%arg0: i32, %arg1: memref<2xi32, #tpu.memory_space<smem>>) -> (i32, i32) {
    %c0_i32 = arith.constant 0 : i32
    %c0_i32_0 = arith.constant 0 : i32
    return %arg0, %c0_i32 : i32, i32
  }
  func.func @transform_2(%arg0: i32, %arg1: memref<2xi32, #tpu.memory_space<smem>>) -> (i32, i32) {
    %c0_i32 = arith.constant 0 : i32
    %c0_i32_0 = arith.constant 0 : i32
    %c0_i32_1 = arith.constant 0 : i32
    return %c0_i32, %c0_i32_0 : i32, i32
  }
  func.func @transform_3(%arg0: i32, %arg1: memref<2xi32, #tpu.memory_space<smem>>) -> (i32, i32) {
    %c0_i32 = arith.constant 0 : i32
    %c0_i32_0 = arith.constant 0 : i32
    %c0_i32_1 = arith.constant 0 : i32
    return %c0_i32, %c0_i32_0 : i32, i32
  }
  func.func @transform_4(%arg0: i32, %arg1: memref<2xi32, #tpu.memory_space<smem>>) -> (i32, i32) {
    %c0_i32 = arith.constant 0 : i32
    %c0_i32_0 = arith.constant 0 : i32
    %c0_i32_1 = arith.constant 0 : i32
    return %c0_i32, %c0_i32_0 : i32, i32
  }
  func.func @transform_5(%arg0: i32, %arg1: memref<2xi32, #tpu.memory_space<smem>>) -> (i32, i32) {
    %c0_i32 = arith.constant 0 : i32
    %c0_i32_0 = arith.constant 0 : i32
    return %arg0, %c0_i32 : i32, i32
  }
  func.func @transform_6(%arg0: i32, %arg1: memref<2xi32, #tpu.memory_space<smem>>) -> (i32, i32) {
    %c0_i32 = arith.constant 0 : i32
    %c0_i32_0 = arith.constant 0 : i32
    %c0_i32_1 = arith.constant 0 : i32
    return %c0_i32, %c0_i32_0 : i32, i32
  }
  func.func @transform_7(%arg0: i32, %arg1: memref<2xi32, #tpu.memory_space<smem>>) -> (i32, i32) {
    %c0_i32 = arith.constant 0 : i32
    %c0_i32_0 = arith.constant 0 : i32
    %c0_i32_1 = arith.constant 0 : i32
    return %c0_i32, %c0_i32_0 : i32, i32
  }
  func.func @transform_8(%arg0: i32, %arg1: memref<2xi32, #tpu.memory_space<smem>>) -> (i32, i32) {
    %c0_i32 = arith.constant 0 : i32
    %c0_i32_0 = arith.constant 0 : i32
    %c0_i32_1 = arith.constant 0 : i32
    return %c0_i32, %c0_i32_0 : i32, i32
  }
  func.func @transform_9(%arg0: i32, %arg1: memref<2xi32, #tpu.memory_space<smem>>) -> (i32, i32) {
    %c0_i32 = arith.constant 0 : i32
    %c0_i32_0 = arith.constant 0 : i32
    %c0_i32_1 = arith.constant 0 : i32
    return %c0_i32, %c0_i32_0 : i32, i32
  }
  func.func @transform_10(%arg0: i32, %arg1: memref<2xi32, #tpu.memory_space<smem>>) -> (i32, i32) {
    %c0_i32 = arith.constant 0 : i32
    %c0_i32_0 = arith.constant 0 : i32
    %c0_i32_1 = arith.constant 0 : i32
    return %c0_i32, %c0_i32_0 : i32, i32
  }
  func.func @transform_11(%arg0: i32, %arg1: memref<2xi32, #tpu.memory_space<smem>>) -> (i32, i32) {
    %c0_i32 = arith.constant 0 : i32
    %c0_i32_0 = arith.constant 0 : i32
    return %arg0, %c0_i32 : i32, i32
  }
}

</mosaic_0001>

<bundles_post_ra>
// kernel: tpu_custom_call.1
= control target key start
LH: loop header
LB: loop body
LE: loop exit
PB: predicated region body
PF: predicated region fallthrough
CT: control target
= control target key end

     0   :  { %s1363_s24 = smov [#allocation3]   ;;  %s1629_s0 = inlined_call_operand.vmem [shape: s32[2], index: 0, kind: input, shape index: {}]   ;;  %s1630_s1 = inlined_call_operand.vmem [shape: f32[64,3], index: 1, kind: input, shape index: {}]   ;;  %s1631_s2 = inlined_call_operand.vmem [shape: s32[64,1], index: 2, kind: input, shape index: {}]   ;;  %s1632_s3 = inlined_call_operand.vmem [shape: f32[3,256], index: 3, kind: input, shape index: {}]   ;;  %s1633_s4 = inlined_call_operand.vmem [shape: s32[1,256], index: 4, kind: input, shape index: {}]   ;;  %s1634_s5 = inlined_call_operand.vmem [shape: bf16[256,16], index: 5, kind: input, shape index: {}]   ;;  %s1635_s6 = inlined_call_operand.vmem [shape: bf16[64,16], index: 6, kind: input, shape index: {}]   ;;  %s1636_s7 = inlined_call_operand.vmem [shape: bf16[16,128], index: 7, kind: input, shape index: {}]   ;;  %s1637_s8 = inlined_call_operand.vmem [shape: bf16[16,128], index: 8, kind: input, shape index: {}]   ;;  %s1638_s9 = inlined_call_operand.vmem [shape: f32[1,128], index: 9, kind: input, shape index: {}]   ;;  %s1639_s10 = inlined_call_operand.vmem [shape: bf16[128,128], index: 10, kind: input, shape index: {}]   ;;  %s1640_s11 = inlined_call_operand.vmem [shape: f32[1,128], index: 11, kind: input, shape index: {}]   ;;  %s1641_s12 = inlined_call_operand.hbm [shape: f32[64,128], index: 12, kind: output, shape index: {}]  }
   0x1   :  { %s18_s23 = sshll.u32 %s1629_s0, 4  ;;  %s19_s23 = int_to_ptr.vmem [resolvable:$true] %s18_s23 }
   0x2   :  { %21 = dma.vmem_to_smem %s19_s23, 16, %s1363_s24, [#allocation2] }
   0x3   :  { %1341 = dma.done.wait [#allocation2], 16 }
   0x4   :  { %1342 = vsyncadd [#allocation2], 4294967280 }
   0x5   :  { %24 = sfence }
   0x6   :  { %25 = vsyncpa [#allocation5], 0 }
   0x7   :  { %27 = vsyncpa [#allocation5 + $0x1], 0  ;;  %s1437_s25 = smov 0   ;;  %s1439_s26 = smov 0  }
   0x8   :  { %s1441_s27 = smov 0   ;;  %s1443_s28 = smov 0  }
   0x9 LB: > { %1643 = sst [smem:[#allocation8_spill]] %s1357_s27  ;;  %s1458_s0 = sadd.s32 4294967295, %s1361_s28   ;;  %s1361_s28 = sphi %s1443_s28, %s1651_s28   ;;  %s1357_s27 = sphi %s1441_s27, %s1648_s27   ;;  %s1353_s26 = sphi %s1439_s26, %s1650_s26   ;;  %s1349_s25 = sphi %s1437_s25, %s1649_s25  }
   0xa   : > { %s1070_s29 = sadd.s32 4294967294, %s1361_s28   ;;  %s1462_s30 = sadd.s32 1, %s1361_s28  }
   0xb   : > { %s286_s13 = sadd.s32 1, %s1357_s27  ;;  %s283_s14 = ssub.s32 %s1361_s28, %s1462_s30 }
   0xc   : > { %p296_p0 = scmp.ne.s32.totalorder %s1357_s27, %s1353_s26  ;;  %p284_p1 = scmp.eq.s32.totalorder %s283_s14, 0 }
   0xd   : > { %p297_p2 = scmp.eq.s32.totalorder %s1458_s0, 1  ;;  %p302_p3 = scmp.ne.s32.totalorder %s1353_s26, %s1349_s25 }
   0xe   : > { %p303_p4 = scmp.eq.s32.totalorder %s1070_s29, 1  ;;  %p1073_p7 = scmp.ge.s32.totalorder %s1361_s28, 1 }
   0xf   : > { %s1473_s15 = scalar_select %p284_p1, %s1357_s27, %s286_s13  }
  0x10   : > { %p1475_p5 = por %p297_p2, %p296_p0  ;;  %p1479_p6 = por %p303_p4, %p302_p3 }
  0x11   : > { %1644 = sst [smem:[#allocation9_spill]] %s1473_s15  ;;  %p372_p8 = scmp.lt.s32.totalorder %s1361_s28, 3 }
  0x13   : > { %p373_p9 = pnand %p1073_p7, %p372_p8 }
  0x14   : > { %s1075_s18 = sshll.u32 (!%p373_p9), %s1458_s0, 2  ;;  %s1487_s19 = sld [smem:[#allocation3 + %s1458_s0]] (!%p373_p9) }
  0x15   : > { %376 = sbr.rel (%p373_p9) target bundleno = 1116 (0x45c), region = 64  ;;  %p423_p10 = scmp.lt.s32.totalorder (!%p373_p9), %s1075_s18, 7 }
  0x1a   : > { %v1364_v0 = vmov 1   ;;  %v1365_v1 = vmov 0   ;;  %v1366_v2 = vmov 2   ;;  %s1653_s18 = smov (!%p423_p10, %s1075_s18), 7  ;;  %s447_s24 = sshra.s32 %s1487_s19, 7 }
  0x1b   : > { %1239 = vset.pattern.permute.xlu1 %v1364_v0  ;;  %1238 = vset.pattern.permute.xlu0 %v1365_v1  ;;  %s1076_s20 = sshll.u32 %s1653_s18, 3  ;;  %s1501_s14 = scalar_lea.vmem %s1633_s4, %s447_s24 }
  0x1c   : > { %1240 = vset.pattern.permute.xlu2 %v1366_v2  ;;  %s426_s23 = scalar_lea.vmem %s1630_s1, %s1076_s20  ;;  %s432_s21 = scalar_lea.vmem %s1631_s2, %s1076_s20  ;;  %v1250_v35 = vld [vmem:[%s1501_s14] ss:$0 sm:$0xff] }
  0x1d   : > { %v443_v3 = vld [vmem:[%s426_s23] sm:$0xff]  ;;  %v444_v4 = vld [vmem:[%s426_s23 + $0x8] sm:$0xff]  ;;  %v445_v7 = vld [vmem:[%s426_s23 + $0x10] sm:$0xff]  ;;  %s1081_s27 = sshll.u32 %s447_s24, 2 }
  0x1e   : > { %488 = vperm.xlu1 %1239, %v443_v3   ;;  %456 = vperm.xlu0 %1238, %v443_v3   ;;  %v545_v5 = vld [vmem:[%s432_s21] sm:$0xff]  ;;  %v546_v6 = vld [vmem:[%s432_s21 + $0x8] sm:$0xff]  ;;  %v446_v8 = vld [vmem:[%s426_s23 + $0x18] sm:$0xff]  ;;  %s450_s22 = scalar_lea.vmem %s1632_s3, %s1081_s27  ;;  %s684_s23 = sshra.s32 %s1487_s19, 3 }
  0x1f   : > { %517 = vperm.xlu2 %1240, %v443_v3   ;;  %v547_v9 = vld [vmem:[%s432_s21 + $0x10] sm:$0xff]  ;;  %v548_v10 = vld [vmem:[%s432_s21 + $0x18] sm:$0xff]  ;;  %v451_v12 = vld [vmem:[%s450_s22] sm:$0x7]  ;;  %s1082_s24 = sshll.u32 %s684_s23, 2  ;;  %s1080_s27 = sshll.u32 %s1653_s18, 2 }
  0x20   : > { %v503_v13 = vperm.slane %v451_v12, 1  ;;  %v474_v15 = vperm.slane %v451_v12, 0  ;;  %v532_v17 = vperm.slane %v451_v12, 2  ;;  %s1543_s14 = scalar_lea.vmem %s1634_s5, %s1082_s24  ;;  %s438_s22 = scalar_lea.vmem %s1635_s6, %s1080_s27 }
  0x21   : > { %s419_s27 = sand.u32 1, %s1353_s26   ;;  %s1192_s24 = sshll.u32 %s1458_s0, 5 }
  0x22   : > { %s975_s13 = scalar_lea.hbm %s1641_s12, %s1192_s24  ;;  %s964_s21 = scalar_lea.sflag [#allocation5], %s419_s27 }
  0x23   : > { %s978_s19 = sshll.u32 %s975_s13, 4  ;;  %s1317_s24 = scalar_lea.hbm %s1641_s12, 64  ;;  %s979_s19 = int_to_ptr.hbm [resolvable:$true] %s978_s19 }
  0x24   : > { %s1311_s15 = sshra.s32 %s979_s19, 4  ;;  %s1312_s15 = int_to_ptr.hbm [resolvable:$true] %s1311_s15 }
  0x25   : > { %s1313_s20 = scalar_lea.hbm %s1312_s15, 32  ;;  %p1318_p0 = scmp.lt.s32.totalorder %s1312_s15, %s1641_s12 }
  0x26   : > { %492 = vperm.xlu1 %1239, %v444_v4   ;;  %461 = vperm.xlu0 %1238, %v444_v4   ;;  %p1314_p11 = scmp.ne.s32.totalorder %s1312_s15, %s1313_s20  ;;  %p1319_p1 = scmp.lt.s32.totalorder %s1317_s24, %s1313_s20 }
  0x27   : > { %521 = vperm.xlu2 %1240, %v444_v4  }
  0x28   : > { %p1315_p12 = pnand %p1314_p11, %p1475_p5  ;;  %p1320_p2 = por %p1319_p1, %p1318_p0 }
  0x2a   : > { %p1316_p13 = pneg %p1315_p12 }
  0x2c   : > { %p1321_p3 = pnand %p1320_p2, %p1316_p13 }
  0x2e   : > { %1241 = vset.pattern.permute.xlu1 %v1365_v1  ;;  %550 = vperm.xlu0 %1238, %v545_v5  }
  0x2f   : > { %553 = vperm.xlu1 %1241, %v546_v6   ;;  %1242 = vset.pattern.permute.xlu2 %v1365_v1 }
  0x30   : > { %466 = vperm.xlu2 %1242, %v445_v7  }
  0x36   : > { %471 = vperm.xlu0 %1238, %v446_v8  }
  0x37   : > { %1243 = vset.pattern.permute.xlu1 %v1364_v0 }
  0x38   : > { %496 = vperm.xlu1 %1243, %v445_v7   ;;  %1244 = vset.pattern.permute.xlu2 %v1364_v0 }
  0x39   : > { %500 = vperm.xlu2 %1244, %v446_v8  }
  0x3e   : > { %1245 = vset.pattern.permute.xlu0 %v1366_v2 }
  0x3f   : > { %525 = vperm.xlu0 %1245, %v445_v7  }
  0x40   : > { %1246 = vset.pattern.permute.xlu1 %v1366_v2 }
  0x41   : > { %529 = vperm.xlu1 %1246, %v446_v8   ;;  %1247 = vset.pattern.permute.xlu2 %v1365_v1 }
  0x42   : > { %556 = vperm.xlu2 %1247, %v547_v9  }
  0x47   : > { %1249 = vset.pattern.permute.xlu0 %v1365_v1 }
  0x49   : > { %1248 = vset.pattern.permute.xlu1 %v1365_v1 }
  0x4a   : > { %559 = vperm.xlu1 %1248, %v548_v10  }
  0x79   : > { %v518_v11 = vpop.permute.xlu2 %517 }
  0x7a   : > { %v533_v21 = vsub.f32 %v518_v11, %v532_v17 }
  0x7c   : > { %v537_v31 = vmul.f32 %v533_v21, %v533_v21 }
  0x81   : > { %v522_v20 = vpop.permute.xlu2 %521 }
  0x82   : > { %v534_v26 = vsub.f32 %v522_v20, %v532_v17 }
  0x84   : > { %v538_v33 = vmul.f32 %v534_v26, %v534_v26 }
  0x8a   : > { %v467_v36 = vpop.permute.xlu2 %466 }
  0x8b   : > { %v477_v46 = vsub.f32 %v467_v36, %v474_v15 }
  0x8d   : > { %v481_v48 = vmul.f32 %v477_v46, %v477_v46 }
  0x90   : > { %v489_v14 = vpop.permute.xlu1 %488  ;;  %v457_v16 = vpop.permute.xlu0 %456 }
  0x91   : > { %v504_v18 = vsub.f32 %v489_v14, %v503_v13  ;;  %v475_v19 = vsub.f32 %v457_v16, %v474_v15 }
  0x93   : > { %v508_v22 = vmul.f32 %v504_v18, %v504_v18  ;;  %v479_v23 = vmul.f32 %v475_v19, %v475_v19  ;;  %v501_v44 = vpop.permute.xlu2 %500 }
  0x94   : > { %v507_v51 = vsub.f32 %v501_v44, %v503_v13 }
  0x95   : > { %v512_v32 = vadd.f32 %v508_v22, %v479_v23 }
  0x96   : > { %v511_v59 = vmul.f32 %v507_v51, %v507_v51 }
  0x97   : > { %v541_v37 = vadd.f32 %v537_v31, %v512_v32 }
  0x98   : > { %v493_v24 = vpop.permute.xlu1 %492  ;;  %v462_v25 = vpop.permute.xlu0 %461 }
  0x99   : > { %v505_v27 = vsub.f32 %v493_v24, %v503_v13  ;;  %v476_v28 = vsub.f32 %v462_v25, %v474_v15 }
  0x9b   : > { %v509_v29 = vmul.f32 %v505_v27, %v505_v27  ;;  %v480_v30 = vmul.f32 %v476_v28, %v476_v28 }
  0x9c   : > { %v557_v54 = vpop.permute.xlu2 %556 }
  0x9d   : > { %v513_v34 = vadd.f32 %v509_v29, %v480_v30  ;;  %vm564_vm2 = vcmp.ne.s32.totalorder %v557_v54, %v1250_v35 }
  0x9f   : > { %v542_v40 = vadd.f32 %v538_v33, %v513_v34 }
  0xa0   : > { %v551_v38 = vpop.permute.xlu0 %550 }
  0xa1   : > { %vm562_vm0 = vcmp.ne.s32.totalorder %v551_v38, %v1250_v35  ;;  %v554_v39 = vpop.permute.xlu1 %553 }
  0xa2   : > { %v566_v41 = vsel %vm562_vm0, 1e+30, %v541_v37  ;;  %vm563_vm1 = vcmp.ne.s32.totalorder %v554_v39, %v1250_v35  ;;  %vm797_vm0 = vcmask 130048  }
  0xa3   : > { %v1512_v42 = vsel %vm563_vm1, 1e+30, %v542_v40  ;;  %570 = vmin.xlane.f32.xlu2 %v566_v41 }
  0xa4   : > { %572 = vmin.xlane.f32.xlu0 %v1512_v42 }
  0xa8   : > { %v472_v43 = vpop.permute.xlu0 %471 }
  0xa9   : > { %v478_v52 = vsub.f32 %v472_v43, %v474_v15 }
  0xaa   : > { %v497_v45 = vpop.permute.xlu1 %496 }
  0xab   : > { %v506_v47 = vsub.f32 %v497_v45, %v503_v13  ;;  %v482_v60 = vmul.f32 %v478_v52, %v478_v52 }
  0xad   : > { %v510_v49 = vmul.f32 %v506_v47, %v506_v47  ;;  %v515_v0 = vadd.f32 %v511_v59, %v482_v60  ;;  %v1177_v60 = vld [vmem:[%s1543_s14 + $0x28] sm:$0xff] }
  0xaf   : > { %v514_v56 = vadd.f32 %v510_v49, %v481_v48 }
  0xb1   : > { %v526_v50 = vpop.permute.xlu0 %525 }
  0xb2   : > { %v535_v53 = vsub.f32 %v526_v50, %v532_v17 }
  0xb3   : > { %v530_v55 = vpop.permute.xlu1 %529 }
  0xb4   : > { %v539_v57 = vmul.f32 %v535_v53, %v535_v53  ;;  %v536_v58 = vsub.f32 %v530_v55, %v532_v17  ;;  %v1179_v53 = vld [vmem:[%s1543_s14 + $0x38] sm:$0xff] }
  0xb5   : > { %752 = vmatpush.bf16.msra.mxu0 %v1179_v53 }
  0xb6   : > { %v543_v61 = vadd.f32 %v539_v57, %v514_v56  ;;  %v540_v62 = vmul.f32 %v536_v58, %v536_v58  ;;  %v1178_v58 = vld [vmem:[%s1543_s14 + $0x30] sm:$0xff] }
  0xb8   : > { %v1515_v63 = vsel %vm564_vm2, 1e+30, %v543_v61  ;;  %v544_v1 = vadd.f32 %v540_v62, %v515_v0  ;;  %v1176_v61 = vld [vmem:[%s1543_s14 + $0x20] sm:$0xff]  ;;  %v1175_v0 = vld [vmem:[%s1543_s14 + $0x18] sm:$0xff] }
  0xb9   : > { %574 = vmin.xlane.f32.xlu1 %v1515_v63  ;;  %753 = vmatpush.bf16.msra.mxu0 %v1178_v58 }
  0xbc   : > { %v560_v2 = vpop.permute.xlu1 %559 }
  0xbd   : > { %vm565_vm3 = vcmp.ne.s32.totalorder %v560_v2, %v1250_v35  ;;  %754 = vmatpush.bf16.msra.mxu0 %v1177_v60 }
  0xbe   : > { %v1518_v3 = vsel %vm565_vm3, 1e+30, %v544_v1 }
  0xbf   : > { %576 = vmin.xlane.f32.xlu2 %v1518_v3 }
  0xc1   : > { %755 = vmatpush.bf16.msra.mxu0 %v1176_v61 }
  0xc5   : > { %756 = vmatpush.bf16.msra.mxu0 %v1175_v0 }
 0x116   : > { %v571_v4 = vpop.xlane.xlu2 %570 }
 0x117   : > { %vm578_vm4 = vcmp.eq.f32.partialorder %v566_v41, %v571_v4  ;;  %v582_v5 = vmax.f32 %v571_v4, 1e-16  ;;  %v573_v6 = vpop.xlane.xlu0 %572 }
 0x118   : > { %vm579_vm5 = vcmp.eq.f32.partialorder %v1512_v42, %v573_v6  ;;  %v598_v7 = vsel %vm578_vm4, 1e+30, %v566_v41  ;;  %v583_v15 = vmax.f32 %v573_v6, 1e-16 }
 0x119   : > { %1253 = vrcp.f32 %v582_v5  ;;  %602 = vmin.xlane.f32.xlu2 %v598_v7  ;;  %v599_v8 = vsel %vm579_vm5, 1e+30, %v1512_v42 }
 0x11a   : > { %604 = vmin.xlane.f32.xlu0 %v599_v8  ;;  %1255 = vrcp.f32 %v583_v15 }
 0x11f   : > { %v1254_v9 = vpop.eup %1253 }
 0x120   : > { %v590_v10 = vsel %vm578_vm4, %v1254_v9, 0.0  ;;  %v1256_v22 = vpop.eup %1255  ;;  %v1174_v9 = vld [vmem:[%s1543_s14 + $0x10] sm:$0xff] }
 0x121   : > { %v591_v26 = vsel %vm579_vm5, %v1256_v22, 0.0  ;;  %757 = vmatpush.bf16.msra.mxu0 %v1174_v9 }
 0x12c   : > { %v575_v11 = vpop.xlane.xlu1 %574 }
 0x12d   : > { %vm580_vm6 = vcmp.eq.f32.partialorder %v1515_v63, %v575_v11  ;;  %v584_v30 = vmax.f32 %v575_v11, 1e-16  ;;  %v1172_v11 = vld [vmem:[%s1543_s14] sm:$0xff] }
 0x12e   : > { %v600_v12 = vsel %vm580_vm6, 1e+30, %v1515_v63 }
 0x12f   : > { %606 = vmin.xlane.f32.xlu1 %v600_v12 }
 0x132   : > { %v577_v13 = vpop.xlane.xlu2 %576 }
 0x133   : > { %vm581_vm7 = vcmp.eq.f32.partialorder %v1518_v3, %v577_v13  ;;  %v585_v34 = vmax.f32 %v577_v13, 1e-16 }
 0x134   : > { %v601_v14 = vsel %vm581_vm7, 1e+30, %v1518_v3 }
 0x135   : > { %608 = vmin.xlane.f32.xlu2 %v601_v14 }
 0x18c   : > { %v603_v16 = vpop.xlane.xlu2 %602 }
 0x18d   : > { %v614_v17 = vmax.f32 %v603_v16, 1e-16  ;;  %v605_v18 = vpop.xlane.xlu0 %604  ;;  %vm610_vm8 = vcmp.eq.f32.partialorder %v598_v7, %v603_v16 }
 0x18e   : > { %v615_v19 = vmax.f32 %v605_v18, 1e-16  ;;  %v630_v20 = vsel %vm610_vm8, 1e+30, %v598_v7  ;;  %vm611_vm9 = vcmp.eq.f32.partialorder %v599_v8, %v605_v18 }
 0x18f   : > { %1257 = vrcp.f32 %v614_v17  ;;  %634 = vmin.xlane.f32.xlu0 %v630_v20  ;;  %v631_v21 = vsel %vm611_vm9, 1e+30, %v599_v8 }
 0x190   : > { %1259 = vrcp.f32 %v615_v19  ;;  %636 = vmin.xlane.f32.xlu1 %v631_v21 }
 0x191   : > { %1261 = vrcp.f32 %v584_v30  ;;  %v1180_v30 = vld [vmem:[%s1636_s7] sm:$0xff] }
 0x192   : > { %842 = vmatpush.bf16.msra.mxu2 %v1180_v30 }
 0x195   : > { %v1258_v23 = vpop.eup %1257 }
 0x196   : > { %v1260_v24 = vpop.eup %1259  ;;  %v622_v25 = vsel %vm610_vm8, %v1258_v23, 0.0 }
 0x197   : > { %v623_v27 = vsel %vm611_vm9, %v1260_v24, 0.0  ;;  %v626_v28 = vadd.f32 %v622_v25, %v590_v10  ;;  %v1262_v36 = vpop.eup %1261  ;;  %v1173_v10 = vld [vmem:[%s1543_s14 + $0x8] sm:$0xff] }
 0x198   : > { %v627_v29 = vadd.f32 %v623_v27, %v591_v26  ;;  %v592_v40 = vsel %vm580_vm6, %v1262_v36, 0.0  ;;  %758 = vmatpush.bf16.msra.mxu0 %v1173_v10 }
 0x19c   : > { %759 = vmatpush.bf16.msra.mxu0 %v1172_v11 }
 0x1a2   : > { %v607_v31 = vpop.xlane.xlu1 %606 }
 0x1a3   : > { %v616_v32 = vmax.f32 %v607_v31, 1e-16  ;;  %vm612_vm10 = vcmp.eq.f32.partialorder %v600_v12, %v607_v31  ;;  %v1183_v31 = vld [vmem:[%s1637_s8] sm:$0xff] }
 0x1a4   : > { %v632_v33 = vsel %vm612_vm10, 1e+30, %v600_v12  ;;  %811 = vmatpush.bf16.msra.mxu1 %v1183_v31 }
 0x1a5   : > { %1263 = vrcp.f32 %v616_v32  ;;  %638 = vmin.xlane.f32.xlu2 %v632_v33  ;;  %v1181_v32 = vld [vmem:[%s438_s22] sm:$0xff] }
 0x1a6   : > { %1265 = vrcp.f32 %v585_v34  ;;  %v1182_v34 = vld [vmem:[%s438_s22 + $0x8] sm:$0xff]  ;;  %s1074_s22 = sshll.u32 %s419_s27, 5 }
 0x1a7   : > { %1127 = vmatmul.msk.bf16.vlgmr.msra.gmra.mxu1 %vm797_vm0, %v1181_v32  ;;  %s421_s23 = scalar_lea.vmem [#allocation4], %s1074_s22 }
 0x1a8   : > { %v609_v35 = vpop.xlane.xlu2 %608  ;;  %s976_s14 = sshll.u32 %s421_s23, 4  ;;  %s977_s14 = int_to_ptr.vmem [resolvable:$true] %s976_s14 }
 0x1a9   : > { %v617_v37 = vmax.f32 %v609_v35, 1e-16  ;;  %vm613_vm11 = vcmp.eq.f32.partialorder %v601_v14, %v609_v35  ;;  %v1191_v35 = vld [vmem:[%s1639_s10 + $0x38] sm:$0xff] }
 0x1aa   : > { %v633_v38 = vsel %vm613_vm11, 1e+30, %v601_v14  ;;  %936 = vmatpush.bf16.msra.mxu3 %v1191_v35 }
 0x1ab   : > { %v1264_v39 = vpop.eup %1263  ;;  %1267 = vrcp.f32 %v617_v37  ;;  %640 = vmin.xlane.f32.xlu0 %v633_v38  ;;  %v1190_v37 = vld [vmem:[%s1639_s10 + $0x30] sm:$0xff] }
 0x1ac   : > { %v624_v41 = vsel %vm612_vm10, %v1264_v39, 0.0  ;;  %v1266_v43 = vpop.eup %1265  ;;  %v1189_v39 = vld [vmem:[%s1639_s10 + $0x28] sm:$0xff] }
 0x1ad   : > { %v628_v42 = vadd.f32 %v624_v41, %v592_v40  ;;  %v593_v45 = vsel %vm581_vm7, %v1266_v43, 0.0  ;;  %v1188_v40 = vld [vmem:[%s1639_s10 + $0x20] sm:$0xff] }
 0x1ae   : > { %937 = vmatpush.bf16.msra.mxu3 %v1190_v37 }
 0x1b1   : > { %v1268_v44 = vpop.eup %1267 }
 0x1b2   : > { %v625_v46 = vsel %vm613_vm11, %v1268_v44, 0.0  ;;  %938 = vmatpush.bf16.msra.mxu3 %v1189_v39  ;;  %v1187_v44 = vld [vmem:[%s1639_s10 + $0x18] sm:$0xff] }
 0x1b3   : > { %v629_v47 = vadd.f32 %v625_v46, %v593_v45  ;;  %v1186_v45 = vld [vmem:[%s1639_s10 + $0x10] sm:$0xff]  ;;  %v1185_v46 = vld [vmem:[%s1639_s10 + $0x8] sm:$0xff] }
 0x1b6   : > { %939 = vmatpush.bf16.msra.mxu3 %v1188_v40 }
 0x1b7   : > { %1128 = vmatmul.msk.bf16.gmra.mxu1 %vm797_vm0, %v1182_v34 }
 0x1ba   : > { %940 = vmatpush.bf16.msra.mxu3 %v1187_v44 }
 0x1be   : > { %941 = vmatpush.bf16.msra.mxu3 %v1186_v45 }
 0x1c2   : > { %942 = vmatpush.bf16.msra.mxu3 %v1185_v46 }
 0x202   : > { %v635_v48 = vpop.xlane.xlu0 %634 }
 0x203   : > { %v646_v49 = vmax.f32 %v635_v48, 1e-16  ;;  %v637_v50 = vpop.xlane.xlu1 %636  ;;  %vm642_vm12 = vcmp.eq.f32.partialorder %v630_v20, %v635_v48 }
 0x204   : > { %v647_v51 = vmax.f32 %v637_v50, 1e-16  ;;  %vm643_vm13 = vcmp.eq.f32.partialorder %v631_v21, %v637_v50 }
 0x205   : > { %1269 = vrcp.f32 %v646_v49 }
 0x206   : > { %1271 = vrcp.f32 %v647_v51  ;;  %v1251_v51 = vld [vmem:[%s1638_s9] ss:$0 sm:$0xff] }
 0x20b   : > { %v1270_v52 = vpop.eup %1269 }
 0x20c   : > { %v1272_v54 = vpop.eup %1271  ;;  %v654_v55 = vsel %vm642_vm12, %v1270_v52, 0.0 }
 0x20d   : > { %v658_v56 = vadd.f32 %v654_v55, %v626_v28  ;;  %v655_v57 = vsel %vm643_vm13, %v1272_v54, 0.0 }
 0x20e   : > { %v659_v59 = vadd.f32 %v655_v57, %v627_v29 }
 0x20f   : > { %662 = vadd.xlane.f32.xlu1 %v658_v56 }
 0x210   : > { %664 = vadd.xlane.f32.xlu2 %v659_v59 }
 0x218   : > { %v639_v62 = vpop.xlane.xlu2 %638 }
 0x219   : > { %v648_v63 = vmax.f32 %v639_v62, 1e-16  ;;  %vm644_vm14 = vcmp.eq.f32.partialorder %v632_v33, %v639_v62 }
 0x21b   : > { %1273 = vrcp.f32 %v648_v63 }
 0x21e   : > { %v641_v1 = vpop.xlane.xlu0 %640 }
 0x21f   : > { %v649_v2 = vmax.f32 %v641_v1, 1e-16  ;;  %vm645_vm15 = vcmp.eq.f32.partialorder %v633_v38, %v641_v1 }
 0x221   : > { %v1274_v3 = vpop.eup %1273  ;;  %1275 = vrcp.f32 %v649_v2 }
 0x222   : > { %v656_v4 = vsel %vm644_vm14, %v1274_v3, 0.0 }
 0x223   : > { %v660_v5 = vadd.f32 %v656_v4, %v628_v42 }
 0x224   : > { %v813_v48 = vpop.f32.mrf.mxu1 }
 0x225   : > { %666 = vadd.xlane.f32.xlu0 %v660_v5 }
 0x227   : > { %v1276_v6 = vpop.eup %1275 }
 0x228   : > { %v657_v7 = vsel %vm645_vm15, %v1276_v6, 0.0 }
 0x229   : > { %v661_v8 = vadd.f32 %v657_v7, %v629_v47  ;;  %v1184_v47 = vld [vmem:[%s1639_s10] sm:$0xff] }
 0x22a   : > { %943 = vmatpush.bf16.msra.mxu3 %v1184_v47  ;;  %v1252_v7 = vld [vmem:[%s1640_s11] ss:$0 sm:$0xff] }
 0x22b   : > { %668 = vadd.xlane.f32.xlu1 %v661_v8 }
 0x22c   : > { %v815_v52 = vpop.f32.mrf.mxu1 }
 0x234   : > { %v818_v60 = vpop.f32.mrf.mxu1 }
 0x23c   : > { %v820_v63 = vpop.f32.mrf.mxu1 }
 0x282   : > { %v663_v12 = vpop.xlane.xlu1 %662 }
 0x283   : > { %v670_v13 = vmax.f32 %v663_v12, 1e-20  ;;  %v665_v14 = vpop.xlane.xlu2 %664 }
 0x284   : > { %v671_v15 = vmax.f32 %v665_v14, 1e-20 }
 0x285   : > { %1277 = vrcp.f32 %v670_v13 }
 0x286   : > { %1279 = vrcp.f32 %v671_v15 }
 0x28b   : > { %v1278_v16 = vpop.eup %1277 }
 0x28c   : > { %v1280_v17 = vpop.eup %1279  ;;  %v678_v18 = vmul.f32 %v1278_v16, %v658_v56 }
 0x28d   : > { %v679_v19 = vmul.f32 %v1280_v17, %v659_v59 }
 0x28f   : > { %v682_v20 = vpack.c.bf16 %v679_v19, %v678_v18 }
 0x291   : > { %760 = vmatmul.bf16.vlgmr.msra.gmra.mxu0 %v682_v20 }
 0x298   : > { %v667_v21 = vpop.xlane.xlu0 %666 }
 0x299   : > { %v672_v22 = vmax.f32 %v667_v21, 1e-20 }
 0x29b   : > { %1281 = vrcp.f32 %v672_v22 }
 0x29e   : > { %v669_v23 = vpop.xlane.xlu1 %668 }
 0x29f   : > { %v673_v24 = vmax.f32 %v669_v23, 1e-20 }
 0x2a1   : > { %1283 = vrcp.f32 %v673_v24  ;;  %v1282_v25 = vpop.eup %1281 }
 0x2a2   : > { %v680_v27 = vmul.f32 %v1282_v25, %v660_v5 }
 0x2a7   : > { %v1284_v26 = vpop.eup %1283 }
 0x2a8   : > { %v681_v28 = vmul.f32 %v1284_v26, %v661_v8 }
 0x2aa   : > { %v683_v29 = vpack.c.bf16 %v681_v28, %v680_v27 }
 0x2ac   : > { %765 = vmatmul.bf16.gmra.mxu0 %v683_v29 }
 0x30e   : > { %v761_v33 = vpop.f32.mrf.mxu0 }
 0x316   : > { %v763_v36 = vpop.f32.mrf.mxu0 }
 0x317   : > { %v771_v38 = vpack.c.bf16 %v763_v36, %v761_v33 }
 0x319   : > { %1133 = vmatmul.msk.bf16.vlgmr.msra.gmra.mxu2 %vm797_vm0, %v771_v38 }
 0x329   : > { %v766_v41 = vpop.f32.mrf.mxu0 }
 0x331   : > { %v768_v42 = vpop.f32.mrf.mxu0 }
 0x332   : > { %v772_v43 = vpack.c.bf16 %v768_v42, %v766_v41 }
 0x334   : > { %1134 = vmatmul.msk.bf16.gmra.mxu2 %vm797_vm0, %v772_v43 }
 0x39c   : > { %v844_v49 = vpop.f32.mrf.mxu2 }
 0x39d   : > { %v845_v50 = vadd.f32 %v844_v49, %v813_v48 }
 0x39f   : > { %v858_v54 = vadd.f32 %v1251_v51, %v845_v50 }
 0x3a1   : > { %v862_v57 = vmax.f32 %v858_v54, 0.0 }
 0x3a4   : > { %v846_v53 = vpop.f32.mrf.mxu2 }
 0x3a5   : > { %v847_v55 = vadd.f32 %v846_v53, %v815_v52 }
 0x3a7   : > { %v859_v56 = vadd.f32 %v1251_v51, %v847_v55 }
 0x3a9   : > { %v863_v58 = vmax.f32 %v859_v56, 0.0 }
 0x3ab   : > { %v866_v59 = vpack.c.bf16 %v863_v58, %v862_v57 }
 0x3ad   : > { %944 = vmatmul.bf16.vlgmr.msra.gmra.mxu3 %v866_v59 }
 0x3b7   : > { %v849_v61 = vpop.f32.mrf.mxu2 }
 0x3b8   : > { %v850_v62 = vadd.f32 %v849_v61, %v818_v60 }
 0x3ba   : > { %v860_v1 = vadd.f32 %v1251_v51, %v850_v62 }
 0x3bc   : > { %v864_v4 = vmax.f32 %v860_v1, 0.0 }
 0x3bf   : > { %v851_v0 = vpop.f32.mrf.mxu2 }
 0x3c0   : > { %v852_v2 = vadd.f32 %v851_v0, %v820_v63 }
 0x3c2   : > { %v861_v3 = vadd.f32 %v1251_v51, %v852_v2 }
 0x3c4   : > { %v865_v5 = vmax.f32 %v861_v3, 0.0 }
 0x3c6   : > { %v867_v6 = vpack.c.bf16 %v865_v5, %v864_v4 }
 0x3c8   : > { %949 = vmatmul.bf16.gmra.mxu3 %v867_v6 }
 0x430   : > { %v945_v8 = vpop.f32.mrf.mxu3 }
 0x431   : > { %v946_v9 = vadd.f32 %v1252_v7, %v945_v8 }
 0x433   : > { %v955_v10 = vmax.f32 %v946_v9, 0.0 }
 0x435   : > { %959 = vst [vmem:[%s421_s23] sm:$0xff] %v955_v10 }
 0x438   : > { %v947_v11 = vpop.f32.mrf.mxu3 }
 0x439   : > { %v948_v12 = vadd.f32 %v1252_v7, %v947_v11 }
 0x43b   : > { %v956_v13 = vmax.f32 %v948_v12, 0.0 }
 0x43d   : > { %960 = vst [vmem:[%s421_s23 + $0x8] sm:$0xff] %v956_v13 }
 0x44b   : > { %v950_v14 = vpop.f32.mrf.mxu3 }
 0x44c   : > { %v951_v15 = vadd.f32 %v1252_v7, %v950_v14 }
 0x44e   : > { %v957_v16 = vmax.f32 %v951_v15, 0.0 }
 0x450   : > { %961 = vst [vmem:[%s421_s23 + $0x10] sm:$0xff] %v957_v16 }
 0x453   : > { %v952_v17 = vpop.f32.mrf.mxu3 }
 0x454   : > { %v953_v18 = vadd.f32 %v1252_v7, %v952_v17 }
 0x456   : > { %v958_v19 = vmax.f32 %v953_v18, 0.0 }
 0x458   : > { %962 = vst [vmem:[%s421_s23 + $0x18] sm:$0xff] %v958_v19 }
 0x459   : > { %1324 = shalt.err (!%p1321_p3)
}
 0x45a   : > { %s1367_s27 = smov 128   ;;  %s1368_s23 = smov 8  }
 0x45b   : > { %1193 = dma.vmem_to_hbm [thread:$0]  (%p1475_p5), %s977_s14, 512, %s979_s19, %s964_s21, %s1367_s27, %s1367_s27, %s1368_s23  }
 0x45c PF: > { %p1199_p4 = scmp.ge.s32.totalorder %s1361_s28, 2  ;;  %s993_s13 = sand.u32 1, %s1349_s25  }
 0x45d   : > { %s994_s0 = scalar_lea.sflag [#allocation5], %s993_s13 }
 0x45e   : > { %p1196_p7 = pnand %p1199_p4, %p1479_p6 }
 0x460   : > { %p1197_p8 = pneg %p1196_p7 }
 0x462   : > { %1344 = dma.done.wait (%p1197_p8), %s994_s0, 512  }
 0x463   : > { %1346 = vsyncadd (%p1197_p8), %s994_s0, 4294966784  ;;  %s1647_s15 = sld [smem:[#allocation8_spill]]  ;;  %p30_p9 = scmp.ge.s32.totalorder %s1462_s30, 4  }
 0x464   : > { %s1648_s27 = sld [smem:[#allocation9_spill]]  ;;  %s1649_s25 = smov %s1353_s26 }
 0x465   : > { %s1651_s28 = smov %s1462_s30  ;;  %32 = sbr.rel (!%p30_p9) target bundleno = 9 (0x9), region = 108 }
 0x469   : > { %s1650_s26 = smov %s1647_s15 }
 0x46a   :  { %1000 = vsyncpa [#allocation5], 1 }
 0x46b   :  { %1002 = vsyncpa [#allocation5 + $0x1], 1 }

</bundles_post_ra>
